<compile_context>
chip_gen: v7x
topology: tpu7x:2x2x1
jax: 0.10.0
libtpu: 0.0.40
codegen_flags: <defaults>
</compile_context>

<pallas_src>
from typing import NamedTuple

import jax
import jax.numpy as jnp
from jax.experimental import pallas as pl
from jax.experimental.pallas import tpu as pltpu


def _round_up(x, m):
    return ((x + m - 1) // m) * m


def credit_kernel(x_ref, w_ref, b_ref, o_ref):
    # [TM, Fp] @ [Fp, Cp] -> [TM, Cp] on the MXU, f32 accumulation regardless of
    # input dtype (bf16-safe on v5e: VPU work below stays in f32).
    y = jnp.dot(x_ref[...], w_ref[...], preferred_element_type=jnp.float32)
    y = y + b_ref[...]
    o_ref[...] = jax.nn.sigmoid(y).astype(o_ref.dtype)


class CreditParams(NamedTuple):
    w_full: jax.Array      # [F, C]  f32 (fallback path)
    b_full: jax.Array      # [1, C]  f32
    w_packed: jax.Array    # [pack*F, pack*C] compute_dtype (block-diagonal)
    b_packed: jax.Array    # [1, pack*C] f32
    pack: int
    num_features: int
    num_classes: int
    compute_dtype: jnp.dtype


def prepare_credit_params(w1, b1, w2, b2, *, compute_dtype=jnp.float32):
    """Fold the two affine layers ONCE (hoisted out of the per-call path).

    w1: [F, 64], b1: [1, 64] or [64], w2: [64, C], b2: [1, C] or [C].
    """
    w1 = jnp.asarray(w1, jnp.float32)
    w2 = jnp.asarray(w2, jnp.float32)
    b1 = jnp.asarray(b1, jnp.float32).reshape(1, -1)
    b2 = jnp.asarray(b2, jnp.float32).reshape(1, -1)
    F = w1.shape[0]
    C = w2.shape[1]

    w = jnp.dot(w1, w2, preferred_element_type=jnp.float32)          # [F, C]
    b = jnp.dot(b1, w2, preferred_element_type=jnp.float32) + b2     # [1, C]

    # Lane-dense packing factor: pack rows 4-at-a-time when F divides 128.
    pack = (128 // F) if (0 < F < 128 and 128 % F == 0) else 1
    if pack > 1:
        w_packed = jax.scipy.linalg.block_diag(*([w] * pack))        # [pF, pC]
        b_packed = jnp.tile(b, (1, pack))                            # [1, pC]
    else:
        w_packed = w
        b_packed = b

    return CreditParams(
        w_full=w, b_full=b,
        w_packed=w_packed.astype(compute_dtype),
        b_packed=b_packed.astype(jnp.float32),
        pack=pack, num_features=F, num_classes=C,
        compute_dtype=jnp.dtype(compute_dtype),
    )


def credit_forward_folded(x, params: CreditParams, *, tm=4096,
                          min_pallas_batch=1024, force_pallas=False):
    """Eval-mode forward with pre-folded params. x: [B, F] -> [B, C] (f32)."""
    B, F = x.shape
    assert F == params.num_features
    C = params.num_classes

    if B < min_pallas_batch and not force_pallas:
        # Tiny-batch fallback: the Pallas launch/DMA latency dominates; let XLA
        # fuse the dot + bias + sigmoid.
        return jax.nn.sigmoid(
            jnp.dot(x.astype(jnp.float32), params.w_full,
                    preferred_element_type=jnp.float32) + params.b_full)

    pack = params.pack
    B_pad = _round_up(B, pack)
    if B_pad != B:
        x = jnp.pad(x, ((0, B_pad - B), (0, 0)))
    Bp = B_pad // pack           # packed rows
    Fp = pack * F                # 128 lanes when F=32
    Cp = pack * C
    xp = x.reshape(Bp, Fp).astype(params.compute_dtype)

    # --- batch tile, in packed-row units ---
    tm_p = max(1, tm // pack)
    if tm_p >= Bp:
        tm_p = Bp                           # single full-height tile (always legal)
    else:
        tm_p = _round_up(tm_p, 8)           # sublane-aligned tile
    # Ensure >= 2 tiles on the "parallel" batch axis when the batch allows it,
    # so both v7x TensorCores get work (no-op cost on 1-TC v5e/v6e).
    if Bp >= 16 and pl.cdiv(Bp, tm_p) < 2:
        tm_p = _round_up(pl.cdiv(Bp, 2), 8)
    grid = (pl.cdiv(Bp, tm_p),)

    # --- VMEM budget (lane/sublane-padded tiles, double-buffered I/O) ---
    itemsize = jnp.dtype(params.compute_dtype).itemsize
    x_tile = _round_up(tm_p, 8) * _round_up(Fp, 128) * itemsize
    o_tile = _round_up(tm_p, 8) * _round_up(Cp, 128) * 4
    w_bytes = _round_up(Fp, 8) * _round_up(Cp, 128) * itemsize
    vmem_limit = int(min(max(2 * (x_tile + o_tile) + w_bytes + (1 << 20),
                             32 << 20), 64 << 20))

    cost = pl.CostEstimate(
        flops=2 * Bp * Fp * Cp,
        transcendentals=Bp * Cp,
        bytes_accessed=Bp * Fp * itemsize + Fp * Cp * itemsize
                       + Cp * 4 + Bp * Cp * 4,
    )

    out = pl.pallas_call(
        credit_kernel,
        out_shape=jax.ShapeDtypeStruct((Bp, Cp), jnp.float32),
        grid=grid,
        in_specs=[
            pl.BlockSpec((tm_p, Fp), lambda i: (i, 0)),   # x tile, pipelined
            pl.BlockSpec((Fp, Cp), lambda i: (0, 0)),     # folded weight, resident
            pl.BlockSpec((1, Cp), lambda i: (0, 0)),      # folded bias, resident
        ],
        out_specs=pl.BlockSpec((tm_p, Cp), lambda i: (i, 0)),
        compiler_params=pltpu.CompilerParams(
            dimension_semantics=("parallel",),
            vmem_limit_bytes=vmem_limit,
        ),
        cost_estimate=cost,
    )(xp, params.w_packed, params.b_packed)

    # Free row-major views: [Bp, pack*C] -> [B_pad, C] -> [B, C].
    return out.reshape(B_pad, C)[:B]


def credit_forward(x, w1, b1, w2, b2, *, tm=4096, compute_dtype=jnp.float32,
                   min_pallas_batch=1024, force_pallas=False):
    """Convenience one-shot API. For repeated inference, call
    prepare_credit_params once and reuse credit_forward_folded."""
    params = prepare_credit_params(w1, b1, w2, b2, compute_dtype=compute_dtype)
    return credit_forward_folded(x, params, tm=tm,
                                 min_pallas_batch=min_pallas_batch,
                                 force_pallas=force_pallas)


def init_params(key, num_features, num_classes, hidden=64):
    """Deterministic init matching nn.Linear's default U(-1/sqrt(fan_in), ...)."""
    k1, k2, k3, k4 = jax.random.split(key, 4)
    bound1 = 1.0 / jnp.sqrt(num_features)
    bound2 = 1.0 / jnp.sqrt(hidden)
    w1 = jax.random.uniform(k1, (num_features, hidden), jnp.float32, -bound1, bound1)
    b1 = jax.random.uniform(k2, (1, hidden), jnp.float32, -bound1, bound1)
    w2 = jax.random.uniform(k3, (hidden, num_classes), jnp.float32, -bound2, bound2)
    b2 = jax.random.uniform(k4, (1, num_classes), jnp.float32, -bound2, bound2)
    return w1, b1, w2, b2


if __name__ == "__main__":
    num_features = 32
    num_classes = 2
    batch = 8

    key = jax.random.PRNGKey(0)
    kx, kp = jax.random.split(key)
    x = jax.random.normal(kx, (batch, num_features), jnp.float32)
    w1, b1, w2, b2 = init_params(kp, num_features, num_classes)

    # Reference in plain JAX (eval-mode dropout == identity).
    ref = jax.nn.sigmoid((x @ w1 + b1) @ w2 + b2)

    # f32 Pallas path (forced: B=8 would otherwise take the XLA fallback).
    params_f32 = prepare_credit_params(w1, b1, w2, b2, compute_dtype=jnp.float32)
    out = jax.block_until_ready(
        credit_forward_folded(x, params_f32, force_pallas=True))
    assert out.shape == (batch, num_classes)
    assert jnp.allclose(out, ref, atol=1e-5, rtol=1e-5)

    # bf16 compute-dtype path (throughput config), looser tolerance.
    params_bf16 = prepare_credit_params(w1, b1, w2, b2, compute_dtype=jnp.bfloat16)
    out_bf16 = jax.block_until_ready(
        credit_forward_folded(x, params_bf16, force_pallas=True))
    assert jnp.allclose(out_bf16, ref, atol=3e-2, rtol=3e-2)

    # Small-batch XLA fallback path.
    out_fb = jax.block_until_ready(credit_forward_folded(x, params_f32))
    assert jnp.allclose(out_fb, ref, atol=1e-5, rtol=1e-5)

    # Batch not a multiple of the pack factor (row padding + tile handling).
    x2 = jax.random.normal(jax.random.PRNGKey(1), (37, num_features), jnp.float32)
    ref2 = jax.nn.sigmoid((x2 @ w1 + b1) @ w2 + b2)
    out2 = jax.block_until_ready(
        credit_forward_folded(x2, params_f32, force_pallas=True))
    assert out2.shape == (37, num_classes)
    assert jnp.allclose(out2, ref2, atol=1e-5, rtol=1e-5)

    print("KERNEL_OK")
</pallas_src>

<mosaic_0001>
module attributes {stable_mosaic.version = 11 : i64} {
  func.func @credit_kernel(%arg0: i32, %arg1: memref<2x128xf32, #tpu.memory_space<vmem>>, %arg2: memref<128x8xf32, #tpu.memory_space<vmem>>, %arg3: memref<1x8xf32, #tpu.memory_space<vmem>>, %arg4: memref<2x8xf32, #tpu.memory_space<vmem>>) attributes {dimension_semantics = [#tpu.dimension_semantics<parallel>], iteration_bounds = array<i64: 1>, scalar_prefetch = 0 : i64, scratch_operands = 0 : i64, tpu.core_type = #tpu.core_type<tc>, window_params = [{transform_indices = @transform_0, window_bounds = array<i64: 2, 128>}, {pipeline_mode = #tpu.pipeline_mode<synchronous>, transform_indices = @transform_1, window_bounds = array<i64: 128, 8>}, {pipeline_mode = #tpu.pipeline_mode<synchronous>, transform_indices = @transform_2, window_bounds = array<i64: 1, 8>}, {transform_indices = @transform_3, window_bounds = array<i64: 2, 8>}]} {
    %c0 = arith.constant 0 : index
    %c0_0 = arith.constant 0 : index
    %0 = vector.load %arg1[%c0, %c0_0] : memref<2x128xf32, #tpu.memory_space<vmem>>, vector<2x128xf32>
    %c0_1 = arith.constant 0 : index
    %c0_2 = arith.constant 0 : index
    %1 = vector.load %arg2[%c0_1, %c0_2] : memref<128x8xf32, #tpu.memory_space<vmem>>, vector<128x8xf32>
    %cst = arith.constant dense<0.000000e+00> : vector<2x8xf32>
    %2 = tpu.matmul %0, %1, %cst {dimension_numbers = #tpu.dot_dimension_numbers<[1], [0], [0], [1], [0, 0, 1, 1], [], []>} : vector<2x128xf32>, vector<128x8xf32>, vector<2x8xf32> -> vector<2x8xf32>
    %c0_3 = arith.constant 0 : index
    %c0_4 = arith.constant 0 : index
    %3 = vector.load %arg3[%c0_3, %c0_4] : memref<1x8xf32, #tpu.memory_space<vmem>>, vector<1x8xf32>
    %4 = vector.broadcast %3 : vector<1x8xf32> to vector<2x8xf32>
    %5 = arith.addf %2, %4 : vector<2x8xf32>
    %6 = arith.negf %5 : vector<2x8xf32>
    %7 = math.exp %6 : vector<2x8xf32>
    %cst_5 = arith.constant 1.000000e+00 : f32
    %8 = vector.broadcast %cst_5 : f32 to vector<2x8xf32>
    %9 = arith.addf %8, %7 : vector<2x8xf32>
    %10 = arith.divf %8, %9 : vector<2x8xf32>
    %c0_6 = arith.constant 0 : index
    %c0_7 = arith.constant 0 : index
    %11 = vector.load %arg4[%c0_6, %c0_7] : memref<2x8xf32, #tpu.memory_space<vmem>>, vector<2x8xf32>
    tpu.vector_store %arg4[%c0_6, %c0_7], %10 {strides = array<i32>} : memref<2x8xf32, #tpu.memory_space<vmem>>, vector<2x8xf32>,
    return
  }
  func.func @transform_0(%arg0: i32) -> (i32, i32) {
    %c0_i32 = arith.constant 0 : i32
    %c0_i32_0 = arith.constant 0 : i32
    return %arg0, %c0_i32 : i32, i32
  }
  func.func @transform_1(%arg0: i32) -> (i32, i32) {
    %c0_i32 = arith.constant 0 : i32
    %c0_i32_0 = arith.constant 0 : i32
    %c0_i32_1 = arith.constant 0 : i32
    return %c0_i32, %c0_i32_0 : i32, i32
  }
  func.func @transform_2(%arg0: i32) -> (i32, i32) {
    %c0_i32 = arith.constant 0 : i32
    %c0_i32_0 = arith.constant 0 : i32
    %c0_i32_1 = arith.constant 0 : i32
    return %c0_i32, %c0_i32_0 : i32, i32
  }
  func.func @transform_3(%arg0: i32) -> (i32, i32) {
    %c0_i32 = arith.constant 0 : i32
    %c0_i32_0 = arith.constant 0 : i32
    return %arg0, %c0_i32 : i32, i32
  }
}

</mosaic_0001>

<bundles_post_ra>
// kernel: tpu_custom_call.1
= control target key start
LH: loop header
LB: loop body
LE: loop exit
PB: predicated region body
PF: predicated region fallthrough
CT: control target
= control target key end

     0   :  { %v241_v3 = vmov 0.0|0.0   ;;  %vm242_vm0 = vmmov 0   ;;  %v243_v6 = vmov 0.0   ;;  %s331_s0 = inlined_call_operand.vmem [shape: f32[2,128], index: 0, kind: input, shape index: {}]   ;;  %s332_s1 = inlined_call_operand.vmem [shape: f32[128,8], index: 1, kind: input, shape index: {}]   ;;  %s333_s2 = inlined_call_operand.vmem [shape: f32[1,8], index: 2, kind: input, shape index: {}]   ;;  %s334_s3 = inlined_call_operand.hbm [shape: f32[2,8], index: 3, kind: output, shape index: {}]  }
   0x1   :  { %v16_v0 = vld [vmem:[%s332_s1] sm:$0xff]  ;;  %v17_v1 = vld [vmem:[%s332_s1 + $0x8] sm:$0xff]  ;;  %v18_v2 = vld [vmem:[%s332_s1 + $0x10] sm:$0xff]  ;;  %185 = vmatprep.subr.bf16.mxu0 %v241_v3  ;;  %182 = vmatprep.mubr.msk.f32.mxu0 %vm242_vm0, %v243_v6 }
   0x2   :  { %v186_v4 = vpack.c.bf16 %v17_v1, %v16_v0  ;;  %v19_v5 = vld [vmem:[%s332_s1 + $0x18] sm:$0xff]  ;;  %v20_v8 = vld [vmem:[%s332_s1 + $0x20] sm:$0xff]  ;;  %v21_v9 = vld [vmem:[%s332_s1 + $0x28] sm:$0xff] }
   0x3   :  { %v189_v7 = vpack.c.bf16 %v19_v5, %v18_v2 }
   0x4   :  { %187 = vmatpush3.bf16.msra.mxu0 %v186_v4 }
   0x5   :  { %188 = vmatprep.subr.bf16.mxu0 %v241_v3 }
   0x6   :  { %8 = vsyncpa [#allocation3], 0  ;;  %v192_v10 = vpack.c.bf16 %v21_v9, %v20_v8  ;;  %v22_v11 = vld [vmem:[%s332_s1 + $0x30] sm:$0xff]  ;;  %v23_v12 = vld [vmem:[%s332_s1 + $0x38] sm:$0xff]  ;;  %vm115_vm1 = vcmask 58368  }
   0x7   :  { %v195_v13 = vpack.c.bf16 %v23_v12, %v22_v11  ;;  %v24_v14 = vld [vmem:[%s332_s1 + $0x40] sm:$0xff]  ;;  %v25_v15 = vld [vmem:[%s332_s1 + $0x48] sm:$0xff]  ;;  %v26_v17 = vld [vmem:[%s332_s1 + $0x50] sm:$0xff] }
   0x8   :  { %190 = vmatpush3.bf16.msra.mxu0 %v189_v7  ;;  %v198_v16 = vpack.c.bf16 %v25_v15, %v24_v14  ;;  %v27_v18 = vld [vmem:[%s332_s1 + $0x58] sm:$0xff]  ;;  %v28_v20 = vld [vmem:[%s332_s1 + $0x60] sm:$0xff]  ;;  %v29_v21 = vld [vmem:[%s332_s1 + $0x68] sm:$0xff] }
   0x9   :  { %191 = vmatprep.subr.bf16.mxu0 %v241_v3  ;;  %v201_v19 = vpack.c.bf16 %v27_v18, %v26_v17  ;;  %v204_v22 = vpack.c.bf16 %v29_v21, %v28_v20  ;;  %v30_v23 = vld [vmem:[%s332_s1 + $0x70] sm:$0xff]  ;;  %v31_v24 = vld [vmem:[%s332_s1 + $0x78] sm:$0xff]  ;;  %v15_v26 = vld [vmem:[%s331_s0] sm:$0x3]  ;;  %s244_s1 = smov [#allocation2]  }
   0xa   :  { %v207_v25 = vpack.c.bf16 %v31_v24, %v30_v23  ;;  %v131_v27 = vld [vmem:[%s333_s2] ss:$0 sm:$0xff]  ;;  %s123_s21 = sshll.u32 %s244_s1, 4  ;;  %s124_s21 = int_to_ptr.vmem [resolvable:$true] %s123_s21 }
   0xb   :  { %s217_s0 = scalar_lea.vmem %s124_s21, 32  ;;  %p222_p1 = scmp.lt.s32.totalorder %s124_s21, %s124_s21 }
   0xc   :  { %193 = vmatpush3.bf16.msra.mxu0 %v192_v10  ;;  %p218_p0 = scmp.ne.s32.totalorder %s124_s21, %s217_s0  ;;  %p223_p2 = scmp.lt.s32.totalorder %s217_s0, %s217_s0 }
   0xd   :  { %194 = vmatprep.subr.bf16.mxu0 %v241_v3 }
   0xe   :  { %p224_p3 = por %p223_p2, %p222_p1 }
  0x10   :  { %196 = vmatpush3.bf16.msra.mxu0 %v195_v13  ;;  %p225_p4 = pnand %p224_p3, %p218_p0 }
  0x11   :  { %197 = vmatprep.subr.bf16.mxu0 %v241_v3 }
  0x14   :  { %199 = vmatpush3.bf16.msra.mxu0 %v198_v16 }
  0x15   :  { %200 = vmatprep.subr.bf16.mxu0 %v241_v3 }
  0x18   :  { %202 = vmatpush3.bf16.msra.mxu0 %v201_v19 }
  0x19   :  { %203 = vmatprep.subr.bf16.mxu0 %v241_v3 }
  0x1c   :  { %205 = vmatpush3.bf16.msra.mxu0 %v204_v22 }
  0x1d   :  { %206 = vmatprep.subr.bf16.mxu0 %v241_v3 }
  0x20   :  { %208 = vmatpush3.bf16.msra.mxu0 %v207_v25 }
  0x23   :  { %183 = vmatmul.mubr.f32.vlgmr.msra.gmra.mrb[0].mxu0 %v15_v26 }
  0xf6   :  { %v105_v28 = vpop.f32.mrb[0].mxu0 }
  0xf7   :  { %v106_v29 = vadd.f32 %v131_v27, %v105_v28  ;;  %v184_v30 = vpop.f32.mrb[1].mxu0 }
  0xf9   :  { %v132_v31 = vmul.f32 -1.442695, %v106_v29 }
  0xfb   :  { %213 = vpow2.f32 %v132_v31 }
 0x105   :  { %v214_v32 = vpop.eup %213 }
 0x106   :  { %v112_v33 = vadd.f32 1.0, %v214_v32 }
 0x108   :  { %215 = vrcp.f32 %v112_v33 }
 0x112   :  { %v216_v34 = vpop.eup %215 }
 0x113   :  { %116 = vst.msk [vmem:[#allocation2] sm:$0x3] %vm115_vm1, %v216_v34 }
 0x114   :  { %228 = shalt.err (!%p225_p4)
}
 0x115   :  { %s229_s23 = scalar_lea.hbm %s334_s3, 32 }
 0x116   :  { %p230_p5 = scmp.ne.s32.totalorder %s334_s3, %s229_s23  ;;  %p233_p6 = scmp.lt.u32.totalorder %s229_s23, %s334_s3 }
 0x118   :  { %p235_p7 = pnand %p233_p6, %p230_p5 }
 0x11a   :  { %238 = shalt.err (!%p235_p7)
}
 0x11b   :  { %126 = dma.vmem_to_hbm [thread:$0]  %s124_s21, 32, %s334_s3, [#allocation3]  }
 0x11c   :  { %239 = dma.done.wait [#allocation3], 32  }
 0x11d   :  { %240 = vsyncadd [#allocation3], 4294967264 }
 0x11e   :  { %130 = vsyncpa [#allocation3], 1 }

</bundles_post_ra>
